<compile_context>
chip_gen: v6e
topology: v6e:2x2x1
jax: 0.10.0
libtpu: 0.0.40
codegen_flags: <defaults>
</compile_context>

<pallas_src>
import functools

import jax
import jax.numpy as jnp
from jax.experimental import pallas as pl
from jax.experimental.pallas import tpu as pltpu


def _round_up(n, m):
    return ((n + m - 1) // m) * m


def _device_kind():
    try:
        return jax.devices()[0].device_kind.lower()
    except Exception:
        return ""


def _default_block_b():
    kind = _device_kind()
    if "v5 lite" in kind or "v5e" in kind:
        return 2048          # 2 x 6 MiB double-buffered x tile (D=768 f32)
    return 4096              # v6e / v7x: 2 x 12 MiB, well inside VMEM


def _tensorcores_per_chip():
    # v7x has 2 TensorCores per chip; older generations have 1.
    return 2 if "v7" in _device_kind() else 1


def _pick_batch_tile(B, D, block_b, itemsize, n_cores):
    """Batch tile: multiple of 8 sublanes, VMEM-safe, >=2 steps on multi-TC chips."""
    tb = min(block_b, _round_up(B, 8))
    # Multi-TC chips (v7x): make sure the "parallel" batch axis has at least
    # two grid steps so both TensorCores get work.
    if n_cores >= 2 and B >= 16 and pl.cdiv(B, tb) < 2:
        tb = _round_up(pl.cdiv(B, 2), 8)
    # Keep the double-buffered x tile comfortably inside VMEM on every gen.
    budget = 40 << 20
    while tb > 8 and 2 * tb * D * itemsize > budget:
        tb = max(8, _round_up(tb // 2, 8))
    return tb


def mn_kernel(x_ref, w_ref, b_ref, o_ref):
    # x_ref: [TB, D] VMEM, w_ref: [1, D] VMEM, b_ref: [1] SMEM, o_ref: [TB, 1] VMEM
    prod = x_ref[...] * w_ref[...]                  # VPU broadcast multiply
    acc = jnp.sum(prod, axis=-1, keepdims=True)     # XLU cross-lane reduce -> [TB, 1]
    o_ref[...] = (acc + b_ref[0]).astype(o_ref.dtype)


def fold_params(params):
    """Fold fc1/fc2/concat/fc3 (eval-mode dropout = identity) into one affine map.

    Done once per parameter set, in exact float32 (elementwise multiply + sum,
    no low-precision matmul), so the kernel output matches a full-f32 reference.
    """
    w1, b1 = params["w1"], params["b1"]        # [64, 512], [64]
    w2, b2 = params["w2"], params["b2"]        # [64, D2],  [64]
    w3, b3 = params["w3"], params["b3"]        # [1, 128],  [1]
    w3a = w3[0, :64]                           # [64]
    w3b = w3[0, 64:]                           # [64]
    w_eff_a = jnp.sum(w1 * w3a[:, None], axis=0)             # [512]  == W1^T @ w3a
    w_eff_b = jnp.sum(w2 * w3b[:, None], axis=0)             # [D2]   == W2^T @ w3b
    w_row = jnp.concatenate([w_eff_a, w_eff_b])[None, :]      # [1, input_size]
    b_eff = (jnp.sum(b1 * w3a) + jnp.sum(b2 * w3b) + b3[0]).reshape(1)  # [1]
    return w_row.astype(jnp.float32), b_eff.astype(jnp.float32)


@functools.partial(jax.jit, static_argnames=("block_b",))
def mn_forward(x, w_row, b_eff, *, block_b=None):
    """x: [B, input_size] f32, w_row: [1, input_size], b_eff: [1]. Returns [B, 1]."""
    B, D = x.shape
    if block_b is None:
        block_b = _default_block_b()
    itemsize = jnp.dtype(x.dtype).itemsize
    tb = _pick_batch_tile(B, D, block_b, itemsize, _tensorcores_per_chip())

    # Explicit VMEM budget: double-buffered x tile + out tiles + resident weight.
    vmem_need = 2 * tb * D * itemsize + 2 * tb * 4 + D * 4 + (1 << 20)
    vmem_limit = int(min(48 << 20, max(32 << 20, vmem_need)))

    cost = pl.CostEstimate(
        flops=2 * B * D,
        transcendentals=0,
        bytes_accessed=B * D * itemsize + B * 4 + D * 4,
    )

    # No padding: ragged last block is handled by Pallas (partial output block
    # is masked on write-back; OOB input rows only affect discarded outputs).
    out = pl.pallas_call(
        mn_kernel,
        out_shape=jax.ShapeDtypeStruct((B, 1), jnp.float32),
        grid=(pl.cdiv(B, tb),),
        in_specs=[
            pl.BlockSpec((tb, D), lambda i: (i, 0)),             # x tile, pipelined
            pl.BlockSpec((1, D), lambda i: (0, 0)),              # folded weight row (VMEM-resident)
            pl.BlockSpec(memory_space=pltpu.MemorySpace.SMEM),   # bias scalar in SMEM
        ],
        out_specs=pl.BlockSpec((tb, 1), lambda i: (i, 0)),
        compiler_params=pltpu.CompilerParams(
            dimension_semantics=("parallel",),     # shard batch tiles across TCs (v7x)
            vmem_limit_bytes=vmem_limit,
        ),
        cost_estimate=cost,
    )(x, w_row, b_eff)
    return out


def init_params(key, input_size):
    """Deterministic init mimicking nn.Linear (uniform +-1/sqrt(fan_in))."""
    D2 = input_size - 512
    k = jax.random.split(key, 6)

    def lin(kw, kb, fan_in, fan_out):
        bound = 1.0 / jnp.sqrt(fan_in)
        w = jax.random.uniform(kw, (fan_out, fan_in), jnp.float32, -bound, bound)
        b = jax.random.uniform(kb, (fan_out,), jnp.float32, -bound, bound)
        return w, b

    w1, b1 = lin(k[0], k[1], 512, 64)
    w2, b2 = lin(k[2], k[3], D2, 64)
    w3, b3 = lin(k[4], k[5], 128, 1)
    return {"w1": w1, "b1": b1, "w2": w2, "b2": b2, "w3": w3, "b3": b3}


def mn_reference(x, params):
    """Pure-JAX reference of the PyTorch forward (eval-mode dropout), full f32."""
    hi = jax.lax.Precision.HIGHEST
    x1 = x[:, :512]
    x2 = x[:, 512:]
    y1 = jnp.dot(x1, params["w1"].T, precision=hi) + params["b1"]
    y2 = jnp.dot(x2, params["w2"].T, precision=hi) + params["b2"]
    cat = jnp.concatenate([y1, y2], axis=1)
    return jnp.dot(cat, params["w3"].T, precision=hi) + params["b3"]


if __name__ == "__main__":
    input_size = 768   # 512 + 256
    batch = 200        # deliberately not a multiple of the tile -> ragged last block

    key = jax.random.PRNGKey(0)
    kx, kp = jax.random.split(key)
    x = jax.random.normal(kx, (batch, input_size), dtype=jnp.float32)
    params = init_params(kp, input_size)

    w_row, b_eff = fold_params(params)       # one-time weight fold (outside the hot path)
    ref = mn_reference(x, params)

    # Ragged-tile path (128-row tiles over 200 rows -> 2 blocks, last one partial).
    out_small = jax.block_until_ready(mn_forward(x, w_row, b_eff, block_b=128))
    # Default per-generation tile path.
    out = jax.block_until_ready(mn_forward(x, w_row, b_eff))

    assert out.shape == (batch, 1)
    assert jnp.allclose(out_small, ref, atol=1e-4, rtol=1e-3), "mismatch vs reference (ragged tiles)"
    assert jnp.allclose(out, ref, atol=1e-4, rtol=1e-3), "mismatch vs reference (default tiles)"

    print("KERNEL_OK")
</pallas_src>

<mosaic_0001>
module attributes {stable_mosaic.version = 11 : i64} {
  func.func @mn_kernel(%arg0: i32, %arg1: memref<128x768xf32, #tpu.memory_space<vmem>>, %arg2: memref<1x768xf32, #tpu.memory_space<vmem>>, %arg3: memref<1xf32, #tpu.memory_space<smem>>, %arg4: memref<128x1xf32, #tpu.memory_space<vmem>>) attributes {dimension_semantics = [#tpu.dimension_semantics<parallel>], iteration_bounds = array<i64: 2>, scalar_prefetch = 0 : i64, scratch_operands = 0 : i64, tpu.core_type = #tpu.core_type<tc>, window_params = [{transform_indices = @transform_0, window_bounds = array<i64: 128, 768>}, {pipeline_mode = #tpu.pipeline_mode<synchronous>, transform_indices = @transform_1, window_bounds = array<i64: 1, 768>}, {transform_indices = @transform_2, window_bounds = array<i64: 1>}, {transform_indices = @transform_3, window_bounds = array<i64: 128, 1>}]} {
    %c0 = arith.constant 0 : index
    %c0_0 = arith.constant 0 : index
    %0 = vector.load %arg1[%c0, %c0_0] : memref<128x768xf32, #tpu.memory_space<vmem>>, vector<128x768xf32>
    %c0_1 = arith.constant 0 : index
    %c0_2 = arith.constant 0 : index
    %1 = vector.load %arg2[%c0_1, %c0_2] : memref<1x768xf32, #tpu.memory_space<vmem>>, vector<1x768xf32>
    %2 = vector.broadcast %1 : vector<1x768xf32> to vector<128x768xf32>
    %3 = arith.mulf %0, %2 : vector<128x768xf32>
    %cst = arith.constant dense<0.000000e+00> : vector<128xf32>
    %4 = vector.multi_reduction <add>, %3, %cst [1] : vector<128x768xf32> to vector<128xf32>
    %5 = vector.shape_cast %4 : vector<128xf32> to vector<128x1xf32>
    %c0_3 = arith.constant 0 : index
    %6 = memref.load %arg3[%c0_3] : memref<1xf32, #tpu.memory_space<smem>>
    %7 = vector.broadcast %6 : f32 to vector<128x1xf32>
    %8 = arith.addf %5, %7 : vector<128x1xf32>
    %c0_4 = arith.constant 0 : index
    %c0_5 = arith.constant 0 : index
    %9 = vector.load %arg4[%c0_4, %c0_5] : memref<128x1xf32, #tpu.memory_space<vmem>>, vector<128x1xf32>
    tpu.vector_store %arg4[%c0_4, %c0_5], %8 {strides = array<i32>} : memref<128x1xf32, #tpu.memory_space<vmem>>, vector<128x1xf32>,
    return
  }
  func.func @transform_0(%arg0: i32) -> (i32, i32) {
    %c0_i32 = arith.constant 0 : i32
    %c0_i32_0 = arith.constant 0 : i32
    return %arg0, %c0_i32 : i32, i32
  }
  func.func @transform_1(%arg0: i32) -> (i32, i32) {
    %c0_i32 = arith.constant 0 : i32
    %c0_i32_0 = arith.constant 0 : i32
    %c0_i32_1 = arith.constant 0 : i32
    return %c0_i32, %c0_i32_0 : i32, i32
  }
  func.func @transform_2(%arg0: i32) -> i32 {
    %c0_i32 = arith.constant 0 : i32
    %c0_i32_0 = arith.constant 0 : i32
    return %c0_i32 : i32
  }
  func.func @transform_3(%arg0: i32) -> (i32, i32) {
    %c0_i32 = arith.constant 0 : i32
    %c0_i32_0 = arith.constant 0 : i32
    return %arg0, %c0_i32 : i32, i32
  }
}

</mosaic_0001>

<bundles_post_ra>
// kernel: mn_forward.1
= control target key start
LH: loop header
LB: loop body
LE: loop exit
PB: predicated region body
PF: predicated region fallthrough
CT: control target
= control target key end

     0   :  { %s1682_s0 = inlined_call_operand.hbm [shape: f32[200,768], index: 0, kind: input, shape index: {}]   ;;  %s1683_s1 = inlined_call_operand.hbm [shape: f32[1,768], index: 1, kind: input, shape index: {}]   ;;  %s1684_s2 = inlined_call_operand.<no memory space> [shape: f32[1], index: 2, kind: input, shape index: {}]   ;;  %s1685_s3 = inlined_call_operand.vmem [shape: f32[200,1], index: 3, kind: output, shape index: {}]  }
   0x1   :  { %8 = sst [smem:[#allocation2]] %s1684_s2 }
   0x2   :  { %9 = vsyncpa [#allocation4], 0 }
   0x3   :  { %11 = vsyncpa [#allocation4 + $0x1], 0 }
   0x4   :  { %12 = vsyncpa [#allocation6], 0  ;;  %s1216_s14 = smov 0   ;;  %s1218_s15 = smov 0  }
   0x5   :  { %s1220_s16 = smov 0   ;;  %s1222_s17 = smov 0  }
   0x6 LB: > { %s1235_s2 = sadd.s32 4294967295, %s1155_s17   ;;  %s1238_s18 = sadd.s32 1, %s1155_s17   ;;  %s1155_s17 = sphi %s1222_s17, %s1699_s17   ;;  %s1151_s16 = sphi %s1220_s16, %s1698_s16   ;;  %s1147_s15 = sphi %s1218_s15, %s1697_s15   ;;  %s1143_s14 = sphi %s1216_s14, %s1696_s14  }
   0x7   : > { %s22_s19 = ssub.s32 %s1155_s17, %s1238_s18  ;;  %s25_s20 = sadd.s32 1, %s1151_s16 }
   0x8   : > { %p23_p0 = scmp.eq.s32.totalorder %s22_s19, 0  ;;  %p32_p1 = scmp.ne.s32.totalorder %s1151_s16, %s1147_s15 }
   0x9   : > { %p33_p2 = scmp.eq.s32.totalorder %s1155_s17, 0  ;;  %p38_p3 = scmp.ne.s32.totalorder %s1147_s15, %s1143_s14 }
   0xa   : > { %s1248_s21 = scalar_select %p23_p0, %s1151_s16, %s25_s20  }
   0xb   : > { %p1250_p4 = por %p33_p2, %p32_p1  ;;  %p39_p5 = scmp.eq.s32.totalorder %s1235_s2, 0 }
   0xc   : > { %p104_p6 = scmp.eq.s32.totalorder %s1235_s2, 1  ;;  %p887_p7 = scmp.ge.s32.totalorder %s1155_s17, 1 }
   0xd   : > { %p1259_p8 = por %p39_p5, %p38_p3  ;;  %p117_p9 = scmp.lt.s32.totalorder %s1155_s17, 3 }
   0xe   : > { %p1264_p10 = por %p104_p6, %p32_p1  ;;  %s1189_s26 = smov [#allocation5]  }
   0xf   : > { %s1688_s23 = scalar_select %p1259_p8, 1, 0 }
  0x10   : > { %s1689_s24 = scalar_select %p1264_p10, 1, 0 }
  0x11   : > { %p1268_p11 = pnand %p887_p7, %p117_p9  ;;  %s130_s27 = sshll.u32 %s1189_s26, 4  ;;  %s131_s27 = int_to_ptr.vmem [resolvable:$true] %s130_s27 }
  0x12   : > { %s1044_s28 = scalar_lea.vmem %s131_s27, 96  ;;  %p1052_p6 = scmp.lt.s32.totalorder %s131_s27, %s131_s27 }
  0x13   : > { %p928_p12 = pneg %p1268_p11  ;;  %p1045_p2 = scmp.ne.s32.totalorder %s131_s27, %s1044_s28 }
  0x14   : > { %p1053_p8 = scmp.lt.s32.totalorder %s1044_s28, %s1044_s28 }
  0x15   : > { %p929_p13 = pnand %p928_p12, %p39_p5 }
  0x16   : > { %p1054_p10 = por %p1053_p8, %p1052_p6 }
  0x17   : > { %p1035_p0 = pneg %p929_p13 }
  0x19   : > { %p1047_p3 = pnand %p1045_p2, %p1035_p0 }
  0x1b   : > { %p1048_p1 = pneg %p1047_p3 }
  0x1d   : > { %p1055_p7 = pnand %p1054_p10, %p1048_p1 }
  0x1f   : > { %1058 = shalt.err (!%p1055_p7)
}
  0x20   : > { %931 = dma.hbm_to_vmem [thread:$0]  (!%p929_p13), %s1683_s1, 96, %s131_s27, [#allocation6]  }
  0x21   : > { %p889_p9 = scmp.ge.s32.totalorder %s1155_s17, 2 }
  0x23   : > { %140 = sbr.rel (%p889_p9) target bundleno = 74 (0x4a), region = 24 }
  0x28   : > { %143 = sbr.rel (!%p1250_p4) target bundleno = 74 (0x4a), region = 28  ;;  %s144_s4 = sand.u32 (%p1250_p4), 1, %s1151_s16  }
  0x29   : > { %s890_s5 = sshll.u32 (%p1250_p4), %s1155_s17, 4  ;;  %s920_s6 = smul.u32 (%p1250_p4), 768, %s144_s4 }
  0x2a   : > { %s150_s7 = ssub.s32 (%p1250_p4), 25, %s890_s5  ;;  %s1287_s10 = scalar_lea.sflag (%p1250_p4), [#allocation4], %s144_s4 }
  0x2b   : > { %p151_p12 = scmp.lt.s32.totalorder (%p1250_p4), %s150_s7, 16  ;;  %s148_s11 = scalar_lea.vmem (%p1250_p4), [#allocation3], %s920_s6 }
  0x2d   : > { %s1701_s7 = smov (!%p151_p12, %s150_s7), 16 }
  0x2e   : > { %s1284_s8 = smul.u32 768, %s1701_s7 }
  0x30   : > { %s156_s9 = ssub.s32 12288, %s1284_s8 }
  0x31   : > { %157 = vsyncadd %s1287_s10, %s156_s9  ;;  %p893_p4 = scmp.ne.s32.totalorder %s1284_s8, 0  ;;  %s921_s12 = smul.u32 12288, %s1155_s17 }
  0x32   : > { %s163_s13 = sshll.u32 %s148_s11, 4  ;;  %s1063_s17 = scalar_lea.hbm %s1682_s0, 19200  ;;  %s1297_s13 = int_to_ptr.vmem [resolvable:$true] %s163_s13 }
  0x33   : > { %s1295_s20 = scalar_lea.hbm %s1682_s0, %s921_s12 }
  0x34   : > { %s1059_s22 = scalar_lea.hbm %s1295_s20, %s1284_s8  ;;  %p1064_p0 = scmp.lt.s32.totalorder %s1295_s20, %s1682_s0 }
  0x35   : > { %p1060_p8 = scmp.ne.s32.totalorder %s1295_s20, %s1059_s22  ;;  %p1065_p2 = scmp.lt.s32.totalorder %s1063_s17, %s1059_s22 }
  0x37   : > { %p1061_p10 = pnand %p1060_p8, %p893_p4  ;;  %p1066_p3 = por %p1065_p2, %p1064_p0 }
  0x39   : > { %p1062_p13 = pneg %p1061_p10 }
  0x3b   : > { %p1067_p1 = pnand %p1066_p3, %p1062_p13 }
  0x3d   : > { %1070 = shalt.err (!%p1067_p1)
}
  0x3e   : > { %s1071_s30 = scalar_lea.vmem %s1297_s13, %s1284_s8  ;;  %s1190_s4 = smov [#allocation3]  }
  0x3f   : > { %p1072_p6 = scmp.ne.s32.totalorder %s1297_s13, %s1071_s30  ;;  %s1075_s5 = sshll.u32 %s1190_s4, 4  ;;  %s1076_s5 = int_to_ptr.vmem [resolvable:$false] %s1075_s5 }
  0x40   : > { %s1077_s6 = scalar_lea.vmem %s1076_s5, 24576  ;;  %p1078_p12 = scmp.lt.s32.totalorder %s1297_s13, %s1076_s5 }
  0x41   : > { %p1073_p7 = pnand %p1072_p6, %p893_p4  ;;  %p1079_p8 = scmp.lt.s32.totalorder %s1077_s6, %s1071_s30 }
  0x43   : > { %p1074_p9 = pneg %p1073_p7  ;;  %p1080_p10 = por %p1079_p8, %p1078_p12 }
  0x45   : > { %p1081_p0 = pnand %p1080_p10, %p1074_p9 }
  0x47   : > { %1084 = shalt.err (!%p1081_p0)
}
  0x48   : > { %s1191_s7 = smov 768   ;;  %s1192_s9 = smov 48  }
  0x49   : > { %169 = dma.hbm_to_vmem [thread:$0]  (%p893_p4), %s1295_s20, %s1284_s8, %s1297_s13, %s1287_s10, %s1191_s7, %s1191_s7, %s1192_s9  }
  0x4a PF: > { %175 = sbr.rel (%p1268_p11) target bundleno = 322 (0x142), region = 32  ;;  %s1326_s11 = sand.u32 (!%p1268_p11), 1, %s1147_s15  }
  0x4b   : > { %s922_s12 = smul.u32 (!%p1268_p11), 768, %s1326_s11  ;;  %s178_s14 = scalar_lea.sflag (!%p1268_p11), [#allocation4], %s1326_s11 }
  0x4c   : > { %p1691_p13 = scmp.ne.s32.totalorder (!%p1268_p11), %s1688_s23, 0 }
  0x4d   : > { %s1330_s19 = scalar_lea.vmem (!%p1268_p11), [#allocation3], %s922_s12 }
  0x4f   : > { %1134 = dma.done.wait (%p1691_p13), %s178_s14, 12288  }
  0x50   : > { %1136 = vsyncadd (%p1691_p13), %s178_s14, 4294955008 }
  0x51   : > { %1138 = dma.done.wait (%p39_p5), [#allocation6], 96  }
  0x52   : > { %1140 = vsyncadd (%p39_p5), [#allocation6], 4294967200  ;;  %v316_v0 = vlaneseq  ;;  %v230_v8 = vld [vmem:[%s1330_s19 + $0x60] sm:$0xff]  ;;  %v231_v9 = vld [vmem:[%s1330_s19 + $0x68] sm:$0xff]  ;;  %s554_s23 = sld [smem:[#allocation2]]  ;;  %s899_s25 = sshll.u32 %s1326_s11, 7 }
  0x53   : > { %v232_v10 = vld [vmem:[%s1330_s19 + $0x70] sm:$0xff]  ;;  %v314_v11 = vld [vmem:[#allocation5] sm:$0x3f]  ;;  %v233_v12 = vld [vmem:[%s1330_s19 + $0x78] sm:$0xff]  ;;  %vm572_vm0 = vcmask 7168   ;;  %s1545_s8 = scalar_lea.vmem [#allocation7], %s899_s25  }
  0x54   : > { %v317_v1 = vshrl.u32 %v316_v0, 7  ;;  %v218_v17 = vld [vmem:[%s1330_s19] sm:$0xff]  ;;  %v219_v18 = vld [vmem:[%s1330_s19 + $0x8] sm:$0xff]  ;;  %v220_v23 = vld [vmem:[%s1330_s19 + $0x10] sm:$0xff]  ;;  %p1692_p5 = scmp.ne.s32.totalorder %s1689_s24, 0 }
  0x55   : > { %v234_v19 = vld [vmem:[%s1330_s19 + $0x80] sm:$0xff]  ;;  %v235_v20 = vld [vmem:[%s1330_s19 + $0x88] sm:$0xff]  ;;  %v221_v27 = vld [vmem:[%s1330_s19 + $0x18] sm:$0xff]  ;;  %s901_s10 = sshll.u32 (%p1692_p5), %s1235_s2, 4  ;;  %s917_s13 = sshll.u32 (%p1692_p5), %s1235_s2, 7 }
  0x56   : > { %v318_v2 = vsub.s32 0, %v317_v1  ;;  %v322_v3 = vsub.s32 1, %v317_v1  ;;  %v326_v4 = vsub.s32 2, %v317_v1  ;;  %v330_v5 = vsub.s32 3, %v317_v1  ;;  %v236_v28 = vld [vmem:[%s1330_s19 + $0x90] sm:$0xff]  ;;  %v237_v29 = vld [vmem:[%s1330_s19 + $0x98] sm:$0xff]  ;;  %s1586_s27 = scalar_lea.vmem (%p1692_p5), %s1685_s3, %s917_s13  }
  0x57   : > { %v334_v6 = vsub.s32 4, %v317_v1  ;;  %v338_v7 = vsub.s32 5, %v317_v1  ;;  %v222_v31 = vld [vmem:[%s1330_s19 + $0x20] sm:$0xff]  ;;  %v223_v32 = vld [vmem:[%s1330_s19 + $0x28] sm:$0xff]  ;;  %v224_v41 = vld [vmem:[%s1330_s19 + $0x30] sm:$0xff]  ;;  %s597_s20 = ssub.s32 (%p1692_p5), 25, %s901_s10 }
  0x58   : > { %v1344_v13 = vrot.slane %v314_v11, %v318_v2  ;;  %v1346_v14 = vrot.slane %v314_v11, %v322_v3  ;;  %v1348_v15 = vrot.slane %v314_v11, %v326_v4  ;;  %v1350_v16 = vrot.slane %v314_v11, %v330_v5  ;;  %v238_v35 = vld [vmem:[%s1330_s19 + $0xa0] sm:$0xff]  ;;  %v239_v40 = vld [vmem:[%s1330_s19 + $0xa8] sm:$0xff]  ;;  %v240_v44 = vld [vmem:[%s1330_s19 + $0xb0] sm:$0xff]  ;;  %p598_p11 = scmp.lt.s32.totalorder (%p1692_p5), %s597_s20, 16 }
  0x59   : > { %v1356_v21 = vrot.slane %v314_v11, %v334_v6  ;;  %v1358_v22 = vrot.slane %v314_v11, %v338_v7  ;;  %v225_v47 = vld [vmem:[%s1330_s19 + $0x38] sm:$0xff]  ;;  %v226_v48 = vld [vmem:[%s1330_s19 + $0x40] sm:$0xff]  ;;  %v227_v54 = vld [vmem:[%s1330_s19 + $0x48] sm:$0xff] }
  0x5a   : > { %v358_v24 = vmul.f32 %v1344_v13, %v230_v8  ;;  %v359_v25 = vmul.f32 %v1346_v14, %v231_v9  ;;  %v360_v26 = vmul.f32 %v1348_v15, %v232_v10  ;;  %v361_v30 = vmul.f32 %v1350_v16, %v233_v12  ;;  %v241_v52 = vld [vmem:[%s1330_s19 + $0xb8] sm:$0xff]  ;;  %v248_v59 = vld [vmem:[%s1330_s19 + $0xf0] sm:$0xff]  ;;  %v250_v2 = vld [vmem:[%s1330_s19 + $0x100] sm:$0xff] }
  0x5b   : > { %v346_v33 = vmul.f32 %v1344_v13, %v218_v17  ;;  %v347_v34 = vmul.f32 %v1346_v14, %v219_v18  ;;  %v362_v36 = vmul.f32 %v1356_v21, %v234_v19  ;;  %v363_v37 = vmul.f32 %v1358_v22, %v235_v20  ;;  %v249_v60 = vld [vmem:[%s1330_s19 + $0xf8] sm:$0xff]  ;;  %v228_v63 = vld [vmem:[%s1330_s19 + $0x50] sm:$0xff]  ;;  %v251_v8 = vld [vmem:[%s1330_s19 + $0x108] sm:$0xff] }
  0x5c   : > { %v456_v38 = vadd.f32 %v359_v25, %v358_v24  ;;  %v348_v39 = vmul.f32 %v1348_v15, %v220_v23  ;;  %v349_v42 = vmul.f32 %v1350_v16, %v221_v27  ;;  %v364_v45 = vmul.f32 %v1344_v13, %v236_v28  ;;  %v229_v6 = vld [vmem:[%s1330_s19 + $0x58] sm:$0xff]  ;;  %v242_v17 = vld [vmem:[%s1330_s19 + $0xc0] sm:$0xff]  ;;  %v252_v23 = vld [vmem:[%s1330_s19 + $0x110] sm:$0xff] }
  0x5d   : > { %v442_v43 = vadd.f32 %v347_v34, %v346_v33  ;;  %v365_v46 = vmul.f32 %v1346_v14, %v237_v29  ;;  %v350_v50 = vmul.f32 %v1356_v21, %v222_v31  ;;  %v351_v51 = vmul.f32 %v1358_v22, %v223_v32  ;;  %v243_v25 = vld [vmem:[%s1330_s19 + $0xc8] sm:$0xff]  ;;  %v245_v32 = vld [vmem:[%s1330_s19 + $0xd8] sm:$0xff] }
  0x5e   : > { %v457_v49 = vadd.f32 %v456_v38, %v360_v26  ;;  %v366_v53 = vmul.f32 %v1348_v15, %v238_v35  ;;  %v367_v56 = vmul.f32 %v1350_v16, %v239_v40  ;;  %v352_v58 = vmul.f32 %v1344_v13, %v224_v41  ;;  %v244_v26 = vld [vmem:[%s1330_s19 + $0xd0] sm:$0xff]  ;;  %v246_v41 = vld [vmem:[%s1330_s19 + $0xe0] sm:$0xff] }
  0x5f   : > { %v443_v55 = vadd.f32 %v442_v43, %v348_v39  ;;  %v463_v57 = vadd.f32 %v365_v46, %v364_v45  ;;  %v368_v62 = vmul.f32 %v1356_v21, %v240_v44  ;;  %v353_v0 = vmul.f32 %v1346_v14, %v225_v47  ;;  %v260_v38 = vld [vmem:[%s1330_s19 + $0x150] sm:$0xff]  ;;  %v261_v39 = vld [vmem:[%s1330_s19 + $0x158] sm:$0xff]  ;;  %v262_v45 = vld [vmem:[%s1330_s19 + $0x160] sm:$0xff] }
  0x60   : > { %v458_v61 = vadd.f32 %v457_v49, %v361_v30  ;;  %v354_v1 = vmul.f32 %v1348_v15, %v226_v48  ;;  %v369_v4 = vmul.f32 %v1358_v22, %v241_v52  ;;  %v355_v7 = vmul.f32 %v1350_v16, %v227_v54  ;;  %v253_v30 = vld [vmem:[%s1330_s19 + $0x118] sm:$0xff] }
  0x61   : > { %v444_v3 = vadd.f32 %v443_v55, %v349_v42  ;;  %v464_v5 = vadd.f32 %v463_v57, %v366_v53  ;;  %v449_v10 = vadd.f32 %v353_v0, %v352_v58  ;;  %v376_v11 = vmul.f32 %v1344_v13, %v248_v59  ;;  %v247_v42 = vld [vmem:[%s1330_s19 + $0xe8] sm:$0xff]  ;;  %v254_v55 = vld [vmem:[%s1330_s19 + $0x120] sm:$0xff]  ;;  %v256_v57 = vld [vmem:[%s1330_s19 + $0x130] sm:$0xff] }
  0x62   : > { %v459_v9 = vadd.f32 %v458_v61, %v362_v36  ;;  %v377_v12 = vmul.f32 %v1346_v14, %v249_v60  ;;  %v356_v20 = vmul.f32 %v1356_v21, %v228_v63  ;;  %v378_v24 = vmul.f32 %v1348_v15, %v250_v2  ;;  %v264_v61 = vld [vmem:[%s1330_s19 + $0x170] sm:$0xff] }
  0x63   : > { %v445_v18 = vadd.f32 %v444_v3, %v350_v50  ;;  %v465_v19 = vadd.f32 %v464_v5, %v367_v56  ;;  %v357_v28 = vmul.f32 %v1358_v22, %v229_v6  ;;  %v450_v29 = vadd.f32 %v449_v10, %v354_v1  ;;  %v263_v50 = vld [vmem:[%s1330_s19 + $0x168] sm:$0xff]  ;;  %v272_v5 = vld [vmem:[%s1330_s19 + $0x1b0] sm:$0xff]  ;;  %v273_v10 = vld [vmem:[%s1330_s19 + $0x1b8] sm:$0xff] }
  0x64   : > { %v460_v27 = vadd.f32 %v459_v9, %v363_v37  ;;  %v379_v31 = vmul.f32 %v1350_v16, %v251_v8  ;;  %v477_v35 = vadd.f32 %v377_v12, %v376_v11  ;;  %v370_v36 = vmul.f32 %v1344_v13, %v242_v17  ;;  %v255_v56 = vld [vmem:[%s1330_s19 + $0x128] sm:$0xff]  ;;  %v274_v11 = vld [vmem:[%s1330_s19 + $0x1c0] sm:$0xff] }
  0x65   : > { %v446_v33 = vadd.f32 %v445_v18, %v351_v51  ;;  %v466_v34 = vadd.f32 %v465_v19, %v368_v62  ;;  %v451_v40 = vadd.f32 %v450_v29, %v355_v7  ;;  %v380_v37 = vmul.f32 %v1356_v21, %v252_v23  ;;  %v265_v62 = vld [vmem:[%s1330_s19 + $0x178] sm:$0xff]  ;;  %v259_v23 = vld [vmem:[%s1330_s19 + $0x148] sm:$0xff]  ;;  %v266_v29 = vld [vmem:[%s1330_s19 + $0x180] sm:$0xff] }
  0x66   : > { %461 = vadd.xlane.f32.xlu1 %v460_v27  ;;  %v371_v43 = vmul.f32 %v1346_v14, %v243_v25  ;;  %v372_v44 = vmul.f32 %v1348_v15, %v244_v26  ;;  %v381_v47 = vmul.f32 %v1358_v22, %v253_v30  ;;  %v478_v48 = vadd.f32 %v477_v35, %v378_v24  ;;  %v275_v24 = vld [vmem:[%s1330_s19 + $0x1c8] sm:$0xff] }
  0x67   : > { %447 = vadd.xlane.f32.xlu0 %v446_v33  ;;  %v467_v46 = vadd.f32 %v466_v34, %v369_v4  ;;  %v373_v49 = vmul.f32 %v1350_v16, %v245_v32  ;;  %v452_v51 = vadd.f32 %v451_v40, %v356_v20  ;;  %v388_v53 = vmul.f32 %v1344_v13, %v260_v38  ;;  %v257_v4 = vld [vmem:[%s1330_s19 + $0x138] sm:$0xff]  ;;  %v258_v20 = vld [vmem:[%s1330_s19 + $0x140] sm:$0xff]  ;;  %v276_v32 = vld [vmem:[%s1330_s19 + $0x1d0] sm:$0xff] }
  0x68   : > { %v470_v52 = vadd.f32 %v371_v43, %v370_v36  ;;  %v389_v54 = vmul.f32 %v1346_v14, %v261_v39  ;;  %v479_v58 = vadd.f32 %v478_v48, %v379_v31  ;;  %v374_v59 = vmul.f32 %v1356_v21, %v246_v41  ;;  %v267_v35 = vld [vmem:[%s1330_s19 + $0x188] sm:$0xff]  ;;  %v268_v36 = vld [vmem:[%s1330_s19 + $0x190] sm:$0xff]  ;;  %v285_v48 = vld [vmem:[%s1330_s19 + $0x218] sm:$0xff] }
  0x69   : > { %v375_v60 = vmul.f32 %v1358_v22, %v247_v42  ;;  %v390_v63 = vmul.f32 %v1348_v15, %v262_v45  ;;  %v453_v0 = vadd.f32 %v452_v51, %v357_v28  ;;  %v391_v2 = vmul.f32 %v1350_v16, %v263_v50  ;;  %v269_v42 = vld [vmem:[%s1330_s19 + $0x198] sm:$0xff]  ;;  %v270_v51 = vld [vmem:[%s1330_s19 + $0x1a0] sm:$0xff] }
  0x6a   : > { %468 = vadd.xlane.f32.xlu1 %v467_v46  ;;  %v471_v1 = vadd.f32 %v470_v52, %v372_v44  ;;  %v491_v3 = vadd.f32 %v389_v54, %v388_v53  ;;  %v480_v6 = vadd.f32 %v479_v58, %v380_v37  ;;  %v382_v7 = vmul.f32 %v1344_v13, %v254_v55  ;;  %v277_v37 = vld [vmem:[%s1330_s19 + $0x1d8] sm:$0xff]  ;;  %v271_v52 = vld [vmem:[%s1330_s19 + $0x1a8] sm:$0xff]  ;;  %v286_v55 = vld [vmem:[%s1330_s19 + $0x220] sm:$0xff] }
  0x6b   : > { %v383_v8 = vmul.f32 %v1346_v14, %v255_v56  ;;  %v384_v9 = vmul.f32 %v1348_v15, %v256_v57  ;;  %454 = vadd.xlane.f32.xlu0 %v453_v0  ;;  %v392_v17 = vmul.f32 %v1356_v21, %v264_v61  ;;  %v393_v18 = vmul.f32 %v1358_v22, %v265_v62 }
  0x6c   : > { %v472_v12 = vadd.f32 %v471_v1, %v373_v49  ;;  %v492_v19 = vadd.f32 %v491_v3, %v390_v63  ;;  %v481_v25 = vadd.f32 %v480_v6, %v381_v47  ;;  %v385_v26 = vmul.f32 %v1350_v16, %v257_v4  ;;  %v284_v47 = vld [vmem:[%s1330_s19 + $0x210] sm:$0xff]  ;;  %v278_v1 = vld [vmem:[%s1330_s19 + $0x1e0] sm:$0xff] }
  0x6d   : > { %v484_v27 = vadd.f32 %v383_v8, %v382_v7  ;;  %v400_v28 = vmul.f32 %v1344_v13, %v272_v5  ;;  %v401_v33 = vmul.f32 %v1346_v14, %v273_v10  ;;  %v402_v34 = vmul.f32 %v1348_v15, %v274_v11  ;;  %v280_v3 = vld [vmem:[%s1330_s19 + $0x1f0] sm:$0xff]  ;;  %v289_v8 = vld [vmem:[%s1330_s19 + $0x238] sm:$0xff] }
  0x6e   : > { %v473_v30 = vadd.f32 %v472_v12, %v374_v59  ;;  %v493_v31 = vadd.f32 %v492_v19, %v391_v2  ;;  %482 = vadd.xlane.f32.xlu1 %v481_v25  ;;  %v386_v38 = vmul.f32 %v1356_v21, %v258_v20  ;;  %v387_v39 = vmul.f32 %v1358_v22, %v259_v23  ;;  %v279_v2 = vld [vmem:[%s1330_s19 + $0x1e8] sm:$0xff]  ;;  %v288_v7 = vld [vmem:[%s1330_s19 + $0x230] sm:$0xff] }
  0x6f   : > { %v485_v40 = vadd.f32 %v484_v27, %v384_v9  ;;  %v403_v41 = vmul.f32 %v1350_v16, %v275_v24  ;;  %v505_v45 = vadd.f32 %v401_v33, %v400_v28  ;;  %v394_v46 = vmul.f32 %v1344_v13, %v266_v29  ;;  %v296_v19 = vld [vmem:[%s1330_s19 + $0x270] sm:$0xff]  ;;  %v298_v27 = vld [vmem:[%s1330_s19 + $0x280] sm:$0xff]  ;;  %v299_v33 = vld [vmem:[%s1330_s19 + $0x288] sm:$0xff] }
  0x70   : > { %v474_v43 = vadd.f32 %v473_v30, %v375_v60  ;;  %v494_v44 = vadd.f32 %v493_v31, %v392_v17  ;;  %v404_v50 = vmul.f32 %v1356_v21, %v276_v32  ;;  %v395_v53 = vmul.f32 %v1346_v14, %v267_v35  ;;  %v287_v60 = vld [vmem:[%s1330_s19 + $0x228] sm:$0xff]  ;;  %v282_v32 = vld [vmem:[%s1330_s19 + $0x200] sm:$0xff] }
  0x71   : > { %v486_v49 = vadd.f32 %v485_v40, %v385_v26  ;;  %v396_v54 = vmul.f32 %v1348_v15, %v268_v36  ;;  %v405_v57 = vmul.f32 %v1358_v22, %v277_v37  ;;  %v506_v58 = vadd.f32 %v505_v45, %v402_v34  ;;  %v297_v26 = vld [vmem:[%s1330_s19 + $0x278] sm:$0xff]  ;;  %v292_v45 = vld [vmem:[%s1330_s19 + $0x250] sm:$0xff] }
  0x72   : > { %475 = vadd.xlane.f32.xlu0 %v474_v43  ;;  %v495_v56 = vadd.f32 %v494_v44, %v393_v18  ;;  %v397_v59 = vmul.f32 %v1350_v16, %v269_v42  ;;  %v498_v62 = vadd.f32 %v395_v53, %v394_v46  ;;  %v412_v63 = vmul.f32 %v1344_v13, %v284_v47  ;;  %v281_v18 = vld [vmem:[%s1330_s19 + $0x1f8] sm:$0xff]  ;;  %v291_v44 = vld [vmem:[%s1330_s19 + $0x248] sm:$0xff] }
  0x73   : > { %v487_v61 = vadd.f32 %v486_v49, %v386_v38  ;;  %v413_v0 = vmul.f32 %v1346_v14, %v285_v48  ;;  %v507_v4 = vadd.f32 %v506_v58, %v403_v41  ;;  %v398_v5 = vmul.f32 %v1356_v21, %v270_v51  ;;  %v283_v41 = vld [vmem:[%s1330_s19 + $0x208] sm:$0xff]  ;;  %v300_v48 = vld [vmem:[%s1330_s19 + $0x290] sm:$0xff] }
  0x74   : > { %496 = vadd.xlane.f32.xlu1 %v495_v56  ;;  %v399_v6 = vmul.f32 %v1358_v22, %v271_v52  ;;  %v414_v9 = vmul.f32 %v1348_v15, %v286_v55  ;;  %v499_v11 = vadd.f32 %v498_v62, %v396_v54  ;;  %v415_v12 = vmul.f32 %v1350_v16, %v287_v60  ;;  %v308_v55 = vld [vmem:[%s1330_s19 + $0x2d0] sm:$0xff]  ;;  %v309_v56 = vld [vmem:[%s1330_s19 + $0x2d8] sm:$0xff]  ;;  %v294_v60 = vld [vmem:[%s1330_s19 + $0x260] sm:$0xff] }
  0x75   : > { %v488_v10 = vadd.f32 %v487_v61, %v387_v39  ;;  %v519_v17 = vadd.f32 %v413_v0, %v412_v63  ;;  %v508_v20 = vadd.f32 %v507_v4, %v404_v50  ;;  %v406_v23 = vmul.f32 %v1344_v13, %v278_v1  ;;  %v290_v39 = vld [vmem:[%s1330_s19 + $0x240] sm:$0xff]  ;;  %v293_v50 = vld [vmem:[%s1330_s19 + $0x258] sm:$0xff]  ;;  %v311_v4 = vld [vmem:[%s1330_s19 + $0x2e8] sm:$0xff] }
  0x76   : > { %v407_v24 = vmul.f32 %v1346_v14, %v279_v2  ;;  %v408_v25 = vmul.f32 %v1348_v15, %v280_v3  ;;  %v500_v28 = vadd.f32 %v499_v11, %v397_v59  ;;  %v416_v29 = vmul.f32 %v1356_v21, %v288_v7  ;;  %v301_v59 = vld [vmem:[%s1330_s19 + $0x298] sm:$0xff]  ;;  %v310_v63 = vld [vmem:[%s1330_s19 + $0x2e0] sm:$0xff]  ;;  %v304_v11 = vld [vmem:[%s1330_s19 + $0x2b0] sm:$0xff] }
  0x77   : > { %489 = vadd.xlane.f32.xlu0 %v488_v10  ;;  %v417_v30 = vmul.f32 %v1358_v22, %v289_v8  ;;  %v520_v31 = vadd.f32 %v519_v17, %v414_v9  ;;  %v509_v34 = vadd.f32 %v508_v20, %v405_v57  ;;  %v409_v35 = vmul.f32 %v1350_v16, %v281_v18  ;;  %v302_v9 = vld [vmem:[%s1330_s19 + $0x2a0] sm:$0xff]  ;;  %v303_v10 = vld [vmem:[%s1330_s19 + $0x2a8] sm:$0xff]  ;;  %v312_v20 = vld [vmem:[%s1330_s19 + $0x2f0] sm:$0xff] }
  0x78   : > { %v512_v36 = vadd.f32 %v407_v24, %v406_v23  ;;  %v424_v38 = vmul.f32 %v1344_v13, %v296_v19  ;;  %v501_v40 = vadd.f32 %v500_v28, %v398_v5  ;;  %v425_v42 = vmul.f32 %v1346_v14, %v297_v26  ;;  %v295_v18 = vld [vmem:[%s1330_s19 + $0x268] sm:$0xff]  ;;  %v305_v28 = vld [vmem:[%s1330_s19 + $0x2b8] sm:$0xff] }
  0x79   : > { %v521_v37 = vadd.f32 %v520_v31, %v415_v12  ;;  %v426_v43 = vmul.f32 %v1348_v15, %v298_v27  ;;  %510 = vadd.xlane.f32.xlu1 %v509_v34  ;;  %v410_v46 = vmul.f32 %v1356_v21, %v282_v32  ;;  %v427_v49 = vmul.f32 %v1350_v16, %v299_v33 }
  0x7a   : > { %v513_v47 = vadd.f32 %v512_v36, %v408_v25  ;;  %v502_v51 = vadd.f32 %v501_v40, %v399_v6  ;;  %v533_v53 = vadd.f32 %v425_v42, %v424_v38  ;;  %v418_v54 = vmul.f32 %v1344_v13, %v290_v39  ;;  %v306_v39 = vld [vmem:[%s1330_s19 + $0x2c0] sm:$0xff] }
  0x7b   : > { %v522_v52 = vadd.f32 %v521_v37, %v416_v29  ;;  %v411_v57 = vmul.f32 %v1358_v22, %v283_v41  ;;  %v419_v61 = vmul.f32 %v1346_v14, %v291_v44  ;;  %v420_v62 = vmul.f32 %v1348_v15, %v292_v45 }
  0x7c   : > { %v514_v58 = vadd.f32 %v513_v47, %v409_v35  ;;  %503 = vadd.xlane.f32.xlu0 %v502_v51  ;;  %v428_v1 = vmul.f32 %v1356_v21, %v300_v48  ;;  %v534_v2 = vadd.f32 %v533_v53, %v426_v43  ;;  %v421_v3 = vmul.f32 %v1350_v16, %v293_v50 }
  0x7d   : > { %v523_v0 = vadd.f32 %v522_v52, %v417_v30  ;;  %v526_v6 = vadd.f32 %v419_v61, %v418_v54  ;;  %v436_v7 = vmul.f32 %v1344_v13, %v308_v55  ;;  %v437_v8 = vmul.f32 %v1346_v14, %v309_v56  ;;  %v313_v30 = vld [vmem:[%s1330_s19 + $0x2f8] sm:$0xff] }
  0x7e   : > { %v515_v5 = vadd.f32 %v514_v58, %v410_v46  ;;  %v429_v12 = vmul.f32 %v1358_v22, %v301_v59  ;;  %v535_v17 = vadd.f32 %v534_v2, %v427_v49  ;;  %v422_v19 = vmul.f32 %v1356_v21, %v294_v60 }
  0x7f   : > { %524 = vadd.xlane.f32.xlu1 %v523_v0  ;;  %v438_v23 = vmul.f32 %v1348_v15, %v310_v63  ;;  %v527_v25 = vadd.f32 %v526_v6, %v420_v62  ;;  %v439_v26 = vmul.f32 %v1350_v16, %v311_v4  ;;  %v547_v27 = vadd.f32 %v437_v8, %v436_v7 }
  0x80   : > { %v516_v24 = vadd.f32 %v515_v5, %v411_v57  ;;  %v536_v29 = vadd.f32 %v535_v17, %v428_v1  ;;  %v430_v31 = vmul.f32 %v1344_v13, %v302_v9  ;;  %v431_v32 = vmul.f32 %v1346_v14, %v303_v10  ;;  %v307_v14 = vld [vmem:[%s1330_s19 + $0x2c8] sm:$0xff] }
  0x81   : > { %v432_v33 = vmul.f32 %v1348_v15, %v304_v11  ;;  %v423_v34 = vmul.f32 %v1358_v22, %v295_v18  ;;  %v528_v35 = vadd.f32 %v527_v25, %v421_v3  ;;  %v440_v36 = vmul.f32 %v1356_v21, %v312_v20 }
  0x82   : > { %517 = vadd.xlane.f32.xlu0 %v516_v24  ;;  %v548_v38 = vadd.f32 %v547_v27, %v438_v23  ;;  %v537_v40 = vadd.f32 %v536_v29, %v429_v12  ;;  %v433_v37 = vmul.f32 %v1350_v16, %v305_v28  ;;  %v540_v41 = vadd.f32 %v431_v32, %v430_v31 }
  0x83   : > { %v529_v42 = vadd.f32 %v528_v35, %v422_v19  ;;  %v441_v43 = vmul.f32 %v1358_v22, %v313_v30  ;;  %v434_v15 = vmul.f32 %v1356_v21, %v306_v39  ;;  %v435_v47 = vmul.f32 %v1358_v22, %v307_v14 }
  0x84   : > { %v549_v13 = vadd.f32 %v548_v38, %v439_v26  ;;  %538 = vadd.xlane.f32.xlu1 %v537_v40  ;;  %v541_v44 = vadd.f32 %v540_v41, %v432_v33  ;;  %v555_v51 = vstv %s554_s23 }
  0x85   : > { %v530_v45 = vadd.f32 %v529_v42, %v423_v34 }
  0x86   : > { %v550_v46 = vadd.f32 %v549_v13, %v440_v36  ;;  %v542_v48 = vadd.f32 %v541_v44, %v433_v37 }
  0x87   : > { %531 = vadd.xlane.f32.xlu0 %v530_v45 }
  0x88   : > { %v551_v49 = vadd.f32 %v550_v46, %v441_v43  ;;  %v543_v50 = vadd.f32 %v542_v48, %v434_v15 }
  0x8a   : > { %552 = vadd.xlane.f32.xlu1 %v551_v49  ;;  %v544_v16 = vadd.f32 %v543_v50, %v435_v47 }
  0x8c   : > { %545 = vadd.xlane.f32.xlu0 %v544_v16 }
  0xef   : > { %v462_v52 = vpop.xlane.xlu1 %461 }
  0xf0   : > { %v558_v53 = vadd.f32 %v555_v51, %v462_v52  ;;  %v448_v54 = vpop.xlane.xlu0 %447 }
  0xf1   : > { %v556_v21 = vadd.f32 %v555_v51, %v448_v54 }
  0xf2   : > { %575 = vst.msk [vmem:[%s1545_s8 + $0x10] sm:$0xff] %vm572_vm0, %v558_v53 }
  0xf3   : > { %573 = vst.msk [vmem:[%s1545_s8] sm:$0xff] %vm572_vm0, %v556_v21  ;;  %v469_v22 = vpop.xlane.xlu1 %468 }
  0xf4   : > { %v559_v55 = vadd.f32 %v555_v51, %v469_v22  ;;  %v455_v56 = vpop.xlane.xlu0 %454 }
  0xf5   : > { %v557_v57 = vadd.f32 %v555_v51, %v455_v56 }
  0xf6   : > { %576 = vst.msk [vmem:[%s1545_s8 + $0x18] sm:$0xff] %vm572_vm0, %v559_v55 }
  0xf7   : > { %574 = vst.msk [vmem:[%s1545_s8 + $0x8] sm:$0xff] %vm572_vm0, %v557_v57  ;;  %v483_v58 = vpop.xlane.xlu1 %482 }
  0xf8   : > { %v561_v59 = vadd.f32 %v555_v51, %v483_v58 }
  0xfa   : > { %578 = vst.msk [vmem:[%s1545_s8 + $0x28] sm:$0xff] %vm572_vm0, %v561_v59 }
  0xfb   : > { %v476_v60 = vpop.xlane.xlu0 %475 }
  0xfc   : > { %v560_v61 = vadd.f32 %v555_v51, %v476_v60 }
  0xfd   : > { %v497_v62 = vpop.xlane.xlu1 %496 }
  0xfe   : > { %577 = vst.msk [vmem:[%s1545_s8 + $0x20] sm:$0xff] %vm572_vm0, %v560_v61  ;;  %v563_v63 = vadd.f32 %v555_v51, %v497_v62 }
 0x100   : > { %580 = vst.msk [vmem:[%s1545_s8 + $0x38] sm:$0xff] %vm572_vm0, %v563_v63  ;;  %v490_v0 = vpop.xlane.xlu0 %489 }
 0x101   : > { %v562_v1 = vadd.f32 %v555_v51, %v490_v0 }
 0x102   : > { %v511_v2 = vpop.xlane.xlu1 %510 }
 0x103   : > { %579 = vst.msk [vmem:[%s1545_s8 + $0x30] sm:$0xff] %vm572_vm0, %v562_v1  ;;  %v565_v3 = vadd.f32 %v555_v51, %v511_v2 }
 0x105   : > { %582 = vst.msk [vmem:[%s1545_s8 + $0x48] sm:$0xff] %vm572_vm0, %v565_v3  ;;  %v504_v4 = vpop.xlane.xlu0 %503 }
 0x106   : > { %v564_v5 = vadd.f32 %v555_v51, %v504_v4 }
 0x108   : > { %v525_v6 = vpop.xlane.xlu1 %524  ;;  %581 = vst.msk [vmem:[%s1545_s8 + $0x40] sm:$0xff] %vm572_vm0, %v564_v5 }
 0x109   : > { %v567_v7 = vadd.f32 %v555_v51, %v525_v6 }
 0x10b   : > { %584 = vst.msk [vmem:[%s1545_s8 + $0x58] sm:$0xff] %vm572_vm0, %v567_v7  ;;  %v518_v8 = vpop.xlane.xlu0 %517 }
 0x10c   : > { %v566_v9 = vadd.f32 %v555_v51, %v518_v8 }
 0x10d   : > { %v539_v10 = vpop.xlane.xlu1 %538 }
 0x10e   : > { %583 = vst.msk [vmem:[%s1545_s8 + $0x50] sm:$0xff] %vm572_vm0, %v566_v9  ;;  %v569_v11 = vadd.f32 %v555_v51, %v539_v10 }
 0x110   : > { %586 = vst.msk [vmem:[%s1545_s8 + $0x68] sm:$0xff] %vm572_vm0, %v569_v11  ;;  %v532_v12 = vpop.xlane.xlu0 %531 }
 0x111   : > { %v568_v17 = vadd.f32 %v555_v51, %v532_v12 }
 0x113   : > { %v553_v18 = vpop.xlane.xlu1 %552  ;;  %585 = vst.msk [vmem:[%s1545_s8 + $0x60] sm:$0xff] %vm572_vm0, %v568_v17 }
 0x114   : > { %v571_v19 = vadd.f32 %v555_v51, %v553_v18  ;;  %595 = sbr.rel (!%p1692_p5) target bundleno = 322 (0x142), region = 44 }
 0x115   : > { %v546_v20 = vpop.xlane.xlu0 %545 }
 0x116   : > { %588 = vst.msk [vmem:[%s1545_s8 + $0x78] sm:$0xff] %vm572_vm0, %v571_v19  ;;  %v570_v23 = vadd.f32 %v555_v51, %v546_v20 }
 0x118   : > { %587 = vst.msk [vmem:[%s1545_s8 + $0x70] sm:$0xff] %vm572_vm0, %v570_v23 }
 0x119   : > { %s1703_s20 = smov (!%p598_p11, %s597_s20), 16 }
 0x11a   : > { %s902_s17 = sshll.u32 %s1703_s20, 7 }
 0x11b   : > { %p905_p4 = scmp.eq.s32.totalorder %s902_s17, 0 }
 0x11c   : > { %s1592_s24 = sshrl.u32 (!%p905_p4), %s1703_s20, 4 }
 0x11d   : > { %606 = sbr.rel (%p905_p4) target bundleno = 322 (0x142), region = 48  ;;  %p906_p2 = scmp.le.s32.totalorder (!%p905_p4), %s1592_s24, 0 }
 0x122   : > { %830 = sbr.rel (%p906_p2) target bundleno = 305 (0x131), region = 130  ;;  %s1693_s2 = smov (!%p906_p2), %s1586_s27 }
 0x123   : > { %s1694_s28 = smov (!%p906_p2), %s1545_s8  ;;  %s1601_s29 = smov (!%p906_p2), 0  }
 0x124   : > { %s1603_s30 = smov (!%p906_p2), 0  }
 0x127 LB: >> { %v699_v24 = vld [vmem:[%s1163_s28] sm:$0xff]  ;;  %v701_v25 = vld [vmem:[%s1163_s28 + $0x8] sm:$0xff]  ;;  %v703_v26 = vld [vmem:[%s1163_s28 + $0x10] sm:$0xff]  ;;  %s731_s4 = sadd.s32 1, %s1167_s29  ;;  %s693_s30 = sadd.s32 1, %s1171_s30   ;;  %s1171_s30 = sphi %s1603_s30, %s693_s30   ;;  %s1167_s29 = sphi %s1601_s29, %s1695_s29   ;;  %s1163_s28 = sphi %s1694_s28, %s736_s28   ;;  %s1159_s2 = sphi %s1693_s2, %s737_s2  }
 0x128   : >> { %700 = vst [vmem:[%s1159_s2] sm:$0xff] %v699_v24  ;;  %702 = vst [vmem:[%s1159_s2 + $0x8] sm:$0xff] %v701_v25  ;;  %v705_v27 = vld [vmem:[%s1163_s28 + $0x18] sm:$0xff]  ;;  %v707_v28 = vld [vmem:[%s1163_s28 + $0x20] sm:$0xff]  ;;  %p732_p3 = scmp.ge.s32.totalorder %s731_s4, %s1592_s24  ;;  %p692_p1 = scmp.ge.s32.totalorder %s693_s30, %s1592_s24 }
 0x129   : >> { %704 = vst [vmem:[%s1159_s2 + $0x10] sm:$0xff] %v703_v26  ;;  %v709_v29 = vld [vmem:[%s1163_s28 + $0x28] sm:$0xff]  ;;  %706 = vst [vmem:[%s1159_s2 + $0x18] sm:$0xff] %v705_v27  ;;  %v711_v30 = vld [vmem:[%s1163_s28 + $0x30] sm:$0xff] }
 0x12a   : >> { %708 = vst [vmem:[%s1159_s2 + $0x20] sm:$0xff] %v707_v28  ;;  %710 = vst [vmem:[%s1159_s2 + $0x28] sm:$0xff] %v709_v29  ;;  %v713_v31 = vld [vmem:[%s1163_s28 + $0x38] sm:$0xff]  ;;  %v715_v32 = vld [vmem:[%s1163_s28 + $0x40] sm:$0xff]  ;;  %s1705_s4 = smov (%p732_p3, %s731_s4), 0 }
 0x12b   : >> { %712 = vst [vmem:[%s1159_s2 + $0x30] sm:$0xff] %v711_v30  ;;  %714 = vst [vmem:[%s1159_s2 + $0x38] sm:$0xff] %v713_v31  ;;  %v717_v33 = vld [vmem:[%s1163_s28 + $0x48] sm:$0xff]  ;;  %v719_v34 = vld [vmem:[%s1163_s28 + $0x50] sm:$0xff]  ;;  %s907_s5 = sshll.u32 %s1705_s4, 7  ;;  %s1695_s29 = smov %s1705_s4 }
 0x12c   : >> { %716 = vst [vmem:[%s1159_s2 + $0x40] sm:$0xff] %v715_v32  ;;  %v721_v35 = vld [vmem:[%s1163_s28 + $0x58] sm:$0xff]  ;;  %718 = vst [vmem:[%s1159_s2 + $0x48] sm:$0xff] %v717_v33  ;;  %v723_v36 = vld [vmem:[%s1163_s28 + $0x60] sm:$0xff]  ;;  %695 = sbr.rel (!%p692_p1) target bundleno = 295 (0x127), region = 136 }
 0x12d   : >> { %720 = vst [vmem:[%s1159_s2 + $0x50] sm:$0xff] %v719_v34  ;;  %722 = vst [vmem:[%s1159_s2 + $0x58] sm:$0xff] %v721_v35  ;;  %v725_v38 = vld [vmem:[%s1163_s28 + $0x68] sm:$0xff]  ;;  %v727_v39 = vld [vmem:[%s1163_s28 + $0x70] sm:$0xff] }
 0x12e   : >> { %724 = vst [vmem:[%s1159_s2 + $0x60] sm:$0xff] %v723_v36  ;;  %726 = vst [vmem:[%s1159_s2 + $0x68] sm:$0xff] %v725_v38  ;;  %v729_v40 = vld [vmem:[%s1163_s28 + $0x78] sm:$0xff]  ;;  %s736_s28 = scalar_lea.vmem %s1545_s8, %s907_s5 [#allocation7]  }
 0x12f   : >> { %728 = vst [vmem:[%s1159_s2 + $0x70] sm:$0xff] %v727_v39  ;;  %730 = vst [vmem:[%s1159_s2 + $0x78] sm:$0xff] %v729_v40  ;;  %s737_s2 = scalar_lea.vmem %s1586_s27, %s907_s5  }
 0x131 PF: > { %s1661_s6 = sand.u32 15, %s1703_s20   ;;  %s918_s7 = sshll.u32 %s1592_s24, 7 }
 0x132   : > { %s742_s9 = scalar_lea.vmem %s1545_s8, %s918_s7 [#allocation7]   ;;  %s744_s11 = scalar_lea.vmem %s1586_s27, %s918_s7  }
 0x133   : > { %p912_p6 = scmp.le.s32.totalorder %s1661_s6, 0 }
 0x134   : > { %s1173_s12 = smov (!%p912_p6), %s744_s11   ;;  %s1177_s14 = smov (!%p912_p6), %s742_s9  }
 0x135   : > { %844 = sbr.rel (%p912_p6) target bundleno = 322 (0x142), region = 141  ;;  %s1181_s19 = smov (!%p912_p6), 0  }
 0x136   : > { %s1185_s23 = smov (!%p912_p6), 0  }
 0x13a LB: >> { %v754_v37 = vld [vmem:[%s1179_s14] sm:$0xff]  ;;  %s756_s25 = sadd.s32 1, %s1183_s19  ;;  %s748_s23 = sadd.s32 1, %s1187_s23   ;;  %s1187_s23 = sphi %s1185_s23, %s748_s23   ;;  %s1183_s19 = sphi %s1181_s19, %s1182_s19   ;;  %s1179_s14 = sphi %s1177_s14, %s761_s14   ;;  %s1175_s12 = sphi %s1173_s12, %s762_s12  }
 0x13b   : >> { %755 = vst [vmem:[%s1175_s12] sm:$0xff] %v754_v37  ;;  %p757_p7 = scmp.ge.s32.totalorder %s756_s25, %s1661_s6  ;;  %p747_p9 = scmp.ge.s32.totalorder %s748_s23, %s1661_s6 }
 0x13d   : >> { %s1707_s25 = smov (%p757_p7, %s756_s25), 0  ;;  %750 = sbr.rel (!%p747_p9) target bundleno = 314 (0x13a), region = 147 }
 0x13e   : >> { %s913_s8 = sshll.u32 %s1707_s25, 3  ;;  %s1182_s19 = smov %s1707_s25  }
 0x13f   : >> { %s761_s14 = scalar_lea.vmem %s742_s9, %s913_s8 [#allocation7]   ;;  %s762_s12 = scalar_lea.vmem %s744_s11, %s913_s8  }
 0x142 PF: > { %p15_p12 = scmp.ge.s32.totalorder %s1238_s18, 4   ;;  %s1696_s14 = smov %s1147_s15 }
 0x143   : > { %s1697_s15 = smov %s1151_s16  ;;  %s1698_s16 = smov %s1248_s21 }
 0x144   : > { %s1699_s17 = smov %s1238_s18  ;;  %17 = sbr.rel (!%p15_p12) target bundleno = 6 (0x6), region = 158 }
 0x149   :  { %778 = vsyncpa [#allocation4], 1 }
 0x14a   :  { %780 = vsyncpa [#allocation4 + $0x1], 1 }
 0x14b   :  { %781 = vsyncpa [#allocation6], 1 }

</bundles_post_ra>
